<compile_context>
chip_gen: v6e
topology: v6e:2x2x1
jax: 0.10.0
libtpu: 0.0.40
codegen_flags: <defaults>
</compile_context>

<pallas_src>
import functools

import numpy as np
import jax
import jax.numpy as jnp
from jax.experimental import pallas as pl
from jax.experimental.pallas import tpu as pltpu


def _synth_kernel(xu_ref, xc_ref, xd_ref, wt_ref, dcoef_ref, noise_ref, bias_ref,
                  out_ref, *, W, act_gain, clamp, alpha):
    """One (batch, spatial-tile) step of the fused SynthesisLayer forward."""
    f32 = jnp.float32
    TILE = out_ref.shape[-1]

    # Tiles always start at an image-row boundary, so the column index of each
    # lane is simply lane % W.  Two border masks cover the kx=0 / kx=2 taps.
    col = jax.lax.broadcasted_iota(jnp.int32, (1, TILE), 1) % W
    not_left = col > 0            # output needs column w-1  -> invalid at w == 0
    not_right = col < (W - 1)     # output needs column w+1  -> invalid at w == W-1

    srcs = (xu_ref[0], xc_ref[0], xd_ref[0])   # rows h-1 / h / h+1, (C_in, TILE)
    zero = jnp.zeros((), srcs[0].dtype)

    acc = jnp.zeros(out_ref.shape[1:], f32)    # (C_out, TILE) f32 accumulator
    for ky in range(3):
        src = srcs[ky]                         # row shift baked in by the wrapper
        for kx in range(3):
            if kx == 1:
                xs = src
            elif kx == 0:
                # output (h, w) needs input column w-1  -> rotate lanes by +1
                xs = jnp.where(not_left, pltpu.roll(src, 1, axis=1), zero)
            else:
                # output (h, w) needs input column w+1  -> rotate lanes by -1
                xs = jnp.where(not_right, pltpu.roll(src, TILE - 1, axis=1), zero)
            acc = acc + jnp.dot(wt_ref[ky * 3 + kx], xs,
                                preferred_element_type=f32)

    y = acc * dcoef_ref[0].astype(f32)         # demodulate output rows (C_out, 1)
    y = y + noise_ref[0].astype(f32)           # (1, TILE) broadcast over C_out
    y = y + bias_ref[...].astype(f32)          # (C_out, 1) broadcast over lanes
    y = jnp.where(y >= 0.0, y, alpha * y) * act_gain
    if clamp is not None:
        y = jnp.clip(y, -clamp, clamp)
    out_ref[0] = y.astype(out_ref.dtype)


def _vmem_capacity_bytes():
    try:
        return int(pltpu.get_tpu_info().vmem_capacity_bytes)
    except Exception:
        return 64 * 1024 * 1024       # conservative default (v7x per-TC VMEM)


def _pick_spatial_tile(H, W, C_in, C_out, in_bytes, out_bytes, budget_bytes):
    """Largest row-aligned, lane-dense tile whose working set fits the budget."""
    resident = 9 * C_out * C_in * in_bytes + 8 * C_out + 4096
    per_lane = (2 * 3 * C_in * in_bytes     # three shifted x blocks, double-buffered
                + 2 * C_out * out_bytes     # output block, double-buffered
                + 2 * 4                     # noise block (f32), double-buffered
                + 8 * C_out                 # f32 accumulator + epilogue temp
                + 2 * C_in * in_bytes)      # rolled / masked input temporaries
    max_lanes = max((budget_bytes - resident) // per_lane, W)
    max_lanes = min(max_lanes, max(2048, W))   # review: 512-2048 lane tiles
    # Row-tile candidates: whole rows, divide H, and either lane-dense multiples
    # of 128 or the full plane (so the (8,128) BlockSpec rule always holds).
    candidates = [tr for tr in range(1, H + 1)
                  if H % tr == 0 and (tr == H or (tr * W) % 128 == 0)]
    valid = [tr for tr in candidates if tr * W <= max_lanes]
    tr = max(valid) if valid else min(candidates)
    return tr * W


def synthesis_layer(x, w, affine_weight, affine_bias, conv_weight, conv_bias,
                    noise_const=None, noise_strength=0.0, *, up=1,
                    noise_mode="const", gain=1.0, conv_clamp=None, rng_key=None,
                    compute_dtype=jnp.bfloat16):
    """Pallas forward of SynthesisLayer (up=1, kernel_size=3, activation='lrelu')."""
    assert noise_mode in ("random", "const", "none")
    if up != 1:
        raise NotImplementedError("only up=1 is implemented")

    N, C_in, H, W = x.shape
    C_out, C_in_w, kh, kw = conv_weight.shape
    assert (C_in_w, kh, kw) == (C_in, 3, 3)
    w_dim = w.shape[1]
    HW = H * W
    f32 = jnp.float32

    # ---- affine (FullyConnectedLayer) hoisted out of the kernel: styles = w@(A*g)^T + b
    w_gain = 1.0 / float(np.sqrt(w_dim))                     # lr_multiplier = 1
    styles = jnp.dot(w.astype(f32), jnp.transpose(affine_weight).astype(f32) * w_gain,
                     precision=jax.lax.Precision.HIGHEST) + affine_bias.astype(f32)

    # ---- demod coefficients from the unmodulated weight:  rsqrt(styles^2 @ sum_k w^2)
    w_f32 = conv_weight.astype(f32)
    w2sum = jnp.sum(jnp.square(w_f32), axis=(2, 3))          # (C_out, C_in)
    dcoefs = jax.lax.rsqrt(
        jnp.einsum("ni,oi->no", jnp.square(styles), w2sum,
                   precision=jax.lax.Precision.HIGHEST) + 1e-8)   # (N, C_out)

    # ---- scale-input formulation: modulate x, build zero-padded row-shifted copies
    x_mod = x.astype(f32) * styles[:, :, None, None]
    zrow = jnp.zeros((N, C_in, 1, W), f32)
    xm_c = x_mod                                             # row h
    xm_u = jnp.concatenate([zrow, x_mod[:, :, :-1, :]], axis=2)   # row h-1 (zero @ top)
    xm_d = jnp.concatenate([x_mod[:, :, 1:, :], zrow], axis=2)    # row h+1 (zero @ bot)
    to_kernel = lambda a: a.astype(compute_dtype).reshape(N, C_in, HW)
    xm_u, xm_c, xm_d = to_kernel(xm_u), to_kernel(xm_c), to_kernel(xm_d)

    # ---- resident conv weight, tap-major (9, C_out, C_in)
    w_taps = jnp.transpose(w_f32, (2, 3, 0, 1)).reshape(9, C_out, C_in).astype(compute_dtype)

    # ---- noise (const noise stays a single resident plane; no N-way HBM broadcast)
    if noise_mode == "random":
        assert rng_key is not None, "noise_mode='random' needs rng_key"
        noise = jax.random.normal(rng_key, (N, 1, HW), f32) * float(noise_strength)
    elif noise_mode == "const":
        noise = (noise_const.astype(f32) * float(noise_strength)).reshape(1, 1, HW)
    else:
        noise = jnp.zeros((1, 1, HW), f32)
    noise_map = (lambda b, i: (b, 0, i)) if noise.shape[0] == N else (lambda b, i: (0, 0, i))

    dcoefs3 = dcoefs.reshape(N, C_out, 1)
    cb = conv_bias.astype(f32).reshape(C_out, 1)

    act_gain = float(np.sqrt(2.0)) * float(gain)             # lrelu def_gain * gain
    act_clamp = float(conv_clamp) * float(gain) if conv_clamp is not None else None

    # ---- tile sizing against the per-generation VMEM capacity
    cap = _vmem_capacity_bytes()
    in_bytes = jnp.dtype(compute_dtype).itemsize
    out_bytes = jnp.dtype(x.dtype).itemsize
    TILE = _pick_spatial_tile(H, W, C_in, C_out, in_bytes, out_bytes,
                              budget_bytes=int(cap * 0.5))
    n_tiles = HW // TILE
    vmem_limit = max(min(int(cap * 0.85), 100 * 1024 * 1024), 32 * 1024 * 1024)

    kernel = functools.partial(_synth_kernel, W=W, act_gain=act_gain,
                               clamp=act_clamp, alpha=0.2)

    flops = 2 * N * 9 * C_out * C_in * HW
    bytes_accessed = (3 * N * C_in * HW * in_bytes          # shifted modulated inputs
                      + N * C_out * HW * out_bytes          # output
                      + int(np.prod(noise.shape)) * 4       # noise
                      + 9 * C_out * C_in * in_bytes         # resident conv weight
                      + N * C_out * 4 + C_out * 4)          # dcoef + bias

    out = pl.pallas_call(
        kernel,
        out_shape=jax.ShapeDtypeStruct((N, C_out, HW), x.dtype),
        grid_spec=pltpu.PrefetchScalarGridSpec(
            num_scalar_prefetch=0,
            grid=(N, n_tiles),
            in_specs=[
                pl.BlockSpec((1, C_in, TILE), lambda b, i: (b, 0, i)),    # x rows h-1
                pl.BlockSpec((1, C_in, TILE), lambda b, i: (b, 0, i)),    # x rows h
                pl.BlockSpec((1, C_in, TILE), lambda b, i: (b, 0, i)),    # x rows h+1
                pl.BlockSpec((9, C_out, C_in), lambda b, i: (0, 0, 0)),   # conv weight (resident)
                pl.BlockSpec((1, C_out, 1), lambda b, i: (b, 0, 0)),      # demod coefs
                pl.BlockSpec((1, 1, TILE), noise_map),                    # noise
                pl.BlockSpec((C_out, 1), lambda b, i: (0, 0)),            # conv bias (resident)
            ],
            out_specs=pl.BlockSpec((1, C_out, TILE), lambda b, i: (b, 0, i)),
        ),
        compiler_params=pltpu.CompilerParams(
            dimension_semantics=("parallel", "parallel"),
            vmem_limit_bytes=vmem_limit),
        cost_estimate=pl.CostEstimate(flops=flops, transcendentals=0,
                                      bytes_accessed=bytes_accessed),
    )(xm_u, xm_c, xm_d, w_taps, dcoefs3, noise, cb)

    return out.reshape(N, C_out, H, W)


def _reference(x, w, affine_weight, affine_bias, conv_weight, conv_bias,
               noise_const, noise_strength, gain=1.0, conv_clamp=None):
    """Pure-JAX reference mirroring the PyTorch forward (up=1, const noise, fused)."""
    N, C_in, H, W = x.shape
    C_out = conv_weight.shape[0]
    w_dim = w.shape[1]
    styles = jnp.dot(w, (affine_weight * (1.0 / np.sqrt(w_dim))).T,
                     precision=jax.lax.Precision.HIGHEST) + affine_bias
    wm = conv_weight[None] * styles[:, None, :, None, None]
    d = jax.lax.rsqrt(jnp.sum(jnp.square(wm), axis=(2, 3, 4)) + 1e-8)
    wm = wm * d[:, :, None, None, None]
    xg = x.reshape(1, N * C_in, H, W)
    wg = wm.reshape(N * C_out, C_in, 3, 3)
    y = jax.lax.conv_general_dilated(
        xg, wg, window_strides=(1, 1), padding=((1, 1), (1, 1)),
        dimension_numbers=("NCHW", "OIHW", "NCHW"), feature_group_count=N,
        precision=jax.lax.Precision.HIGHEST)
    y = y.reshape(N, C_out, H, W)
    y = y + (noise_const * noise_strength)[None, None]
    y = y + conv_bias[None, :, None, None]
    y = jnp.where(y >= 0, y, 0.2 * y) * (np.sqrt(2.0) * gain)
    if conv_clamp is not None:
        y = jnp.clip(y, -conv_clamp * gain, conv_clamp * gain)
    return y


if __name__ == "__main__":
    key = jax.random.PRNGKey(0)
    ks = jax.random.split(key, 6)

    N, C_in, C_out, w_dim, res = 2, 4, 8, 32, 16

    x = jax.random.normal(ks[0], (N, C_in, res, res), dtype=jnp.float32)
    w = jax.random.normal(ks[1], (N, w_dim), dtype=jnp.float32)
    affine_weight = jax.random.normal(ks[2], (C_in, w_dim), dtype=jnp.float32)
    affine_bias = jnp.ones((C_in,), jnp.float32)              # bias_init = 1
    conv_weight = jax.random.normal(ks[3], (C_out, C_in, 3, 3), dtype=jnp.float32)
    conv_bias = jnp.zeros((C_out,), jnp.float32)
    noise_const = jax.random.normal(ks[4], (res, res), dtype=jnp.float32)
    noise_strength = 0.1

    ref = _reference(x, w, affine_weight, affine_bias, conv_weight, conv_bias,
                     noise_const, noise_strength)

    # Exact-precision path (f32 MXU matmuls): tight check vs the fused reference.
    out_f32 = synthesis_layer(x, w, affine_weight, affine_bias, conv_weight,
                              conv_bias, noise_const, noise_strength,
                              noise_mode="const", compute_dtype=jnp.float32)
    out_f32 = jax.block_until_ready(out_f32)
    assert out_f32.shape == (N, C_out, res, res), out_f32.shape
    err32 = float(jnp.max(jnp.abs(out_f32 - ref)))
    assert jnp.allclose(out_f32, ref, atol=5e-3, rtol=5e-3), f"f32 mismatch: {err32}"

    # Fast path (bf16 MXU matmuls, f32 accumulation): looser tolerance.
    out_bf16 = synthesis_layer(x, w, affine_weight, affine_bias, conv_weight,
                               conv_bias, noise_const, noise_strength,
                               noise_mode="const")            # compute_dtype=bf16
    out_bf16 = jax.block_until_ready(out_bf16)
    assert out_bf16.shape == (N, C_out, res, res), out_bf16.shape
    err16 = float(jnp.max(jnp.abs(out_bf16 - ref)))
    assert jnp.allclose(out_bf16, ref, atol=1e-1, rtol=5e-2), f"bf16 mismatch: {err16}"

    print("KERNEL_OK")
</pallas_src>

<mosaic_0001>
module attributes {stable_mosaic.version = 11 : i64} {
  func.func @_synth_kernel(%arg0: i32, %arg1: i32, %arg2: memref<1x4x256xf32, #tpu.memory_space<vmem>>, %arg3: memref<1x4x256xf32, #tpu.memory_space<vmem>>, %arg4: memref<1x4x256xf32, #tpu.memory_space<vmem>>, %arg5: memref<9x8x4xf32, #tpu.memory_space<vmem>>, %arg6: memref<1x8x1xf32, #tpu.memory_space<vmem>>, %arg7: memref<1x1x256xf32, #tpu.memory_space<vmem>>, %arg8: memref<8x1xf32, #tpu.memory_space<vmem>>, %arg9: memref<1x8x256xf32, #tpu.memory_space<vmem>>) attributes {dimension_semantics = [#tpu.dimension_semantics<parallel>, #tpu.dimension_semantics<parallel>], iteration_bounds = array<i64: 2, 1>, scalar_prefetch = 0 : i64, scratch_operands = 0 : i64, tpu.core_type = #tpu.core_type<tc>, window_params = [{transform_indices = @transform_0, window_bounds = array<i64: 1, 4, 256>}, {transform_indices = @transform_1, window_bounds = array<i64: 1, 4, 256>}, {transform_indices = @transform_2, window_bounds = array<i64: 1, 4, 256>}, {pipeline_mode = #tpu.pipeline_mode<synchronous>, transform_indices = @transform_3, window_bounds = array<i64: 9, 8, 4>}, {transform_indices = @transform_4, window_bounds = array<i64: 1, 8, 1>}, {transform_indices = @transform_5, window_bounds = array<i64: 1, 1, 256>}, {pipeline_mode = #tpu.pipeline_mode<synchronous>, transform_indices = @transform_6, window_bounds = array<i64: 8, 1>}, {transform_indices = @transform_7, window_bounds = array<i64: 1, 8, 256>}]} {
    %0 = tpu.iota {dimensions = array<i32: 1>} : vector<1x256xi32>
    %c16_i32 = arith.constant 16 : i32
    %c0_i32 = arith.constant 0 : i32
    %1 = arith.cmpi eq, %c16_i32, %c0_i32 : i32
    %c1_i32 = arith.constant 1 : i32
    %2 = arith.select %1, %c1_i32, %c16_i32 : i32
    %3 = vector.broadcast %2 : i32 to vector<1x256xi32>
    %4 = arith.remsi %0, %3 : vector<1x256xi32>
    %c0_i32_0 = arith.constant 0 : i32
    %5 = vector.broadcast %c0_i32_0 : i32 to vector<1x256xi32>
    %6 = arith.cmpi ne, %4, %5 : vector<1x256xi32>
    %c0_i32_1 = arith.constant 0 : i32
    %7 = vector.broadcast %c0_i32_1 : i32 to vector<1x256xi32>
    %8 = arith.cmpi slt, %4, %7 : vector<1x256xi32>
    %c0_i32_2 = arith.constant 0 : i32
    %9 = arith.cmpi slt, %2, %c0_i32_2 : i32
    %10 = vector.broadcast %9 : i1 to vector<1x256xi1>
    %11 = vector.broadcast %10 : vector<1x256xi1> to vector<1x256xi1>
    %12 = arith.xori %8, %11 : vector<1x256xi1>
    %13 = arith.andi %12, %6 : vector<1x256xi1>
    %14 = vector.broadcast %2 : i32 to vector<1x256xi32>
    %15 = arith.addi %4, %14 : vector<1x256xi32>
    %16 = arith.select %13, %15, %4 : vector<1x256xi1>, vector<1x256xi32>
    %c0_i32_3 = arith.constant 0 : i32
    %17 = vector.broadcast %c0_i32_3 : i32 to vector<1x256xi32>
    %18 = arith.cmpi sgt, %16, %17 : vector<1x256xi32>
    %c15_i32 = arith.constant 15 : i32
    %19 = vector.broadcast %c15_i32 : i32 to vector<1x256xi32>
    %20 = arith.cmpi slt, %16, %19 : vector<1x256xi32>
    %c0 = arith.constant 0 : index
    %c0_4 = arith.constant 0 : index
    %c0_5 = arith.constant 0 : index
    %21 = vector.load %arg2[%c0, %c0_4, %c0_5] : memref<1x4x256xf32, #tpu.memory_space<vmem>>, vector<1x4x256xf32>
    %22 = vector.shape_cast %21 : vector<1x4x256xf32> to vector<4x256xf32>
    %c0_6 = arith.constant 0 : index
    %c0_7 = arith.constant 0 : index
    %c0_8 = arith.constant 0 : index
    %23 = vector.load %arg3[%c0_6, %c0_7, %c0_8] : memref<1x4x256xf32, #tpu.memory_space<vmem>>, vector<1x4x256xf32>
    %24 = vector.shape_cast %23 : vector<1x4x256xf32> to vector<4x256xf32>
    %c0_9 = arith.constant 0 : index
    %c0_10 = arith.constant 0 : index
    %c0_11 = arith.constant 0 : index
    %25 = vector.load %arg4[%c0_9, %c0_10, %c0_11] : memref<1x4x256xf32, #tpu.memory_space<vmem>>, vector<1x4x256xf32>
    %26 = vector.shape_cast %25 : vector<1x4x256xf32> to vector<4x256xf32>
    %cst = arith.constant 0.000000e+00 : f32
    %27 = vector.broadcast %cst : f32 to vector<8x256xf32>
    %c1_i32_12 = arith.constant 1 : i32
    %28 = tpu.dynamic_rotate %22 by %c1_i32_12 dim 1 : vector<4x256xf32>, i32 -> vector<4x256xf32>
    %cst_13 = arith.constant 0.000000e+00 : f32
    %29 = vector.shape_cast %18 : vector<1x256xi1> to vector<1x256xi1>
    %30 = vector.broadcast %29 : vector<1x256xi1> to vector<4x256xi1>
    %31 = vector.broadcast %cst_13 : f32 to vector<4x256xf32>
    %32 = arith.select %30, %28, %31 : vector<4x256xi1>, vector<4x256xf32>
    %c0_14 = arith.constant 0 : index
    %c0_15 = arith.constant 0 : index
    %c0_16 = arith.constant 0 : index
    %33 = vector.load %arg5[%c0_14, %c0_15, %c0_16] : memref<9x8x4xf32, #tpu.memory_space<vmem>>, vector<1x8x4xf32>
    %34 = vector.shape_cast %33 : vector<1x8x4xf32> to vector<8x4xf32>
    %cst_17 = arith.constant dense<0.000000e+00> : vector<8x256xf32>
    %35 = tpu.matmul %34, %32, %cst_17 {dimension_numbers = #tpu.dot_dimension_numbers<[1], [0], [0], [1], [0, 0, 1, 1], [], []>} : vector<8x4xf32>, vector<4x256xf32>, vector<8x256xf32> -> vector<8x256xf32>
    %36 = arith.addf %27, %35 : vector<8x256xf32>
    %c1 = arith.constant 1 : index
    %c0_18 = arith.constant 0 : index
    %c0_19 = arith.constant 0 : index
    %37 = vector.load %arg5[%c1, %c0_18, %c0_19] : memref<9x8x4xf32, #tpu.memory_space<vmem>>, vector<1x8x4xf32>
    %38 = vector.shape_cast %37 : vector<1x8x4xf32> to vector<8x4xf32>
    %cst_20 = arith.constant dense<0.000000e+00> : vector<8x256xf32>
    %39 = tpu.matmul %38, %22, %cst_20 {dimension_numbers = #tpu.dot_dimension_numbers<[1], [0], [0], [1], [0, 0, 1, 1], [], []>} : vector<8x4xf32>, vector<4x256xf32>, vector<8x256xf32> -> vector<8x256xf32>
    %40 = arith.addf %36, %39 : vector<8x256xf32>
    %c255_i32 = arith.constant 255 : i32
    %41 = tpu.dynamic_rotate %22 by %c255_i32 dim 1 : vector<4x256xf32>, i32 -> vector<4x256xf32>
    %cst_21 = arith.constant 0.000000e+00 : f32
    %42 = vector.shape_cast %20 : vector<1x256xi1> to vector<1x256xi1>
    %43 = vector.broadcast %42 : vector<1x256xi1> to vector<4x256xi1>
    %44 = vector.broadcast %cst_21 : f32 to vector<4x256xf32>
    %45 = arith.select %43, %41, %44 : vector<4x256xi1>, vector<4x256xf32>
    %c2 = arith.constant 2 : index
    %c0_22 = arith.constant 0 : index
    %c0_23 = arith.constant 0 : index
    %46 = vector.load %arg5[%c2, %c0_22, %c0_23] : memref<9x8x4xf32, #tpu.memory_space<vmem>>, vector<1x8x4xf32>
    %47 = vector.shape_cast %46 : vector<1x8x4xf32> to vector<8x4xf32>
    %cst_24 = arith.constant dense<0.000000e+00> : vector<8x256xf32>
    %48 = tpu.matmul %47, %45, %cst_24 {dimension_numbers = #tpu.dot_dimension_numbers<[1], [0], [0], [1], [0, 0, 1, 1], [], []>} : vector<8x4xf32>, vector<4x256xf32>, vector<8x256xf32> -> vector<8x256xf32>
    %49 = arith.addf %40, %48 : vector<8x256xf32>
    %c1_i32_25 = arith.constant 1 : i32
    %50 = tpu.dynamic_rotate %24 by %c1_i32_25 dim 1 : vector<4x256xf32>, i32 -> vector<4x256xf32>
    %cst_26 = arith.constant 0.000000e+00 : f32
    %51 = vector.shape_cast %18 : vector<1x256xi1> to vector<1x256xi1>
    %52 = vector.broadcast %51 : vector<1x256xi1> to vector<4x256xi1>
    %53 = vector.broadcast %cst_26 : f32 to vector<4x256xf32>
    %54 = arith.select %52, %50, %53 : vector<4x256xi1>, vector<4x256xf32>
    %c3 = arith.constant 3 : index
    %c0_27 = arith.constant 0 : index
    %c0_28 = arith.constant 0 : index
    %55 = vector.load %arg5[%c3, %c0_27, %c0_28] : memref<9x8x4xf32, #tpu.memory_space<vmem>>, vector<1x8x4xf32>
    %56 = vector.shape_cast %55 : vector<1x8x4xf32> to vector<8x4xf32>
    %cst_29 = arith.constant dense<0.000000e+00> : vector<8x256xf32>
    %57 = tpu.matmul %56, %54, %cst_29 {dimension_numbers = #tpu.dot_dimension_numbers<[1], [0], [0], [1], [0, 0, 1, 1], [], []>} : vector<8x4xf32>, vector<4x256xf32>, vector<8x256xf32> -> vector<8x256xf32>
    %58 = arith.addf %49, %57 : vector<8x256xf32>
    %c4 = arith.constant 4 : index
    %c0_30 = arith.constant 0 : index
    %c0_31 = arith.constant 0 : index
    %59 = vector.load %arg5[%c4, %c0_30, %c0_31] : memref<9x8x4xf32, #tpu.memory_space<vmem>>, vector<1x8x4xf32>
    %60 = vector.shape_cast %59 : vector<1x8x4xf32> to vector<8x4xf32>
    %cst_32 = arith.constant dense<0.000000e+00> : vector<8x256xf32>
    %61 = tpu.matmul %60, %24, %cst_32 {dimension_numbers = #tpu.dot_dimension_numbers<[1], [0], [0], [1], [0, 0, 1, 1], [], []>} : vector<8x4xf32>, vector<4x256xf32>, vector<8x256xf32> -> vector<8x256xf32>
    %62 = arith.addf %58, %61 : vector<8x256xf32>
    %c255_i32_33 = arith.constant 255 : i32
    %63 = tpu.dynamic_rotate %24 by %c255_i32_33 dim 1 : vector<4x256xf32>, i32 -> vector<4x256xf32>
    %cst_34 = arith.constant 0.000000e+00 : f32
    %64 = vector.shape_cast %20 : vector<1x256xi1> to vector<1x256xi1>
    %65 = vector.broadcast %64 : vector<1x256xi1> to vector<4x256xi1>
    %66 = vector.broadcast %cst_34 : f32 to vector<4x256xf32>
    %67 = arith.select %65, %63, %66 : vector<4x256xi1>, vector<4x256xf32>
    %c5 = arith.constant 5 : index
    %c0_35 = arith.constant 0 : index
    %c0_36 = arith.constant 0 : index
    %68 = vector.load %arg5[%c5, %c0_35, %c0_36] : memref<9x8x4xf32, #tpu.memory_space<vmem>>, vector<1x8x4xf32>
    %69 = vector.shape_cast %68 : vector<1x8x4xf32> to vector<8x4xf32>
    %cst_37 = arith.constant dense<0.000000e+00> : vector<8x256xf32>
    %70 = tpu.matmul %69, %67, %cst_37 {dimension_numbers = #tpu.dot_dimension_numbers<[1], [0], [0], [1], [0, 0, 1, 1], [], []>} : vector<8x4xf32>, vector<4x256xf32>, vector<8x256xf32> -> vector<8x256xf32>
    %71 = arith.addf %62, %70 : vector<8x256xf32>
    %c1_i32_38 = arith.constant 1 : i32
    %72 = tpu.dynamic_rotate %26 by %c1_i32_38 dim 1 : vector<4x256xf32>, i32 -> vector<4x256xf32>
    %cst_39 = arith.constant 0.000000e+00 : f32
    %73 = vector.shape_cast %18 : vector<1x256xi1> to vector<1x256xi1>
    %74 = vector.broadcast %73 : vector<1x256xi1> to vector<4x256xi1>
    %75 = vector.broadcast %cst_39 : f32 to vector<4x256xf32>
    %76 = arith.select %74, %72, %75 : vector<4x256xi1>, vector<4x256xf32>
    %c6 = arith.constant 6 : index
    %c0_40 = arith.constant 0 : index
    %c0_41 = arith.constant 0 : index
    %77 = vector.load %arg5[%c6, %c0_40, %c0_41] : memref<9x8x4xf32, #tpu.memory_space<vmem>>, vector<1x8x4xf32>
    %78 = vector.shape_cast %77 : vector<1x8x4xf32> to vector<8x4xf32>
    %cst_42 = arith.constant dense<0.000000e+00> : vector<8x256xf32>
    %79 = tpu.matmul %78, %76, %cst_42 {dimension_numbers = #tpu.dot_dimension_numbers<[1], [0], [0], [1], [0, 0, 1, 1], [], []>} : vector<8x4xf32>, vector<4x256xf32>, vector<8x256xf32> -> vector<8x256xf32>
    %80 = arith.addf %71, %79 : vector<8x256xf32>
    %c7 = arith.constant 7 : index
    %c0_43 = arith.constant 0 : index
    %c0_44 = arith.constant 0 : index
    %81 = vector.load %arg5[%c7, %c0_43, %c0_44] : memref<9x8x4xf32, #tpu.memory_space<vmem>>, vector<1x8x4xf32>
    %82 = vector.shape_cast %81 : vector<1x8x4xf32> to vector<8x4xf32>
    %cst_45 = arith.constant dense<0.000000e+00> : vector<8x256xf32>
    %83 = tpu.matmul %82, %26, %cst_45 {dimension_numbers = #tpu.dot_dimension_numbers<[1], [0], [0], [1], [0, 0, 1, 1], [], []>} : vector<8x4xf32>, vector<4x256xf32>, vector<8x256xf32> -> vector<8x256xf32>
    %84 = arith.addf %80, %83 : vector<8x256xf32>
    %c255_i32_46 = arith.constant 255 : i32
    %85 = tpu.dynamic_rotate %26 by %c255_i32_46 dim 1 : vector<4x256xf32>, i32 -> vector<4x256xf32>
    %cst_47 = arith.constant 0.000000e+00 : f32
    %86 = vector.shape_cast %20 : vector<1x256xi1> to vector<1x256xi1>
    %87 = vector.broadcast %86 : vector<1x256xi1> to vector<4x256xi1>
    %88 = vector.broadcast %cst_47 : f32 to vector<4x256xf32>
    %89 = arith.select %87, %85, %88 : vector<4x256xi1>, vector<4x256xf32>
    %c8 = arith.constant 8 : index
    %c0_48 = arith.constant 0 : index
    %c0_49 = arith.constant 0 : index
    %90 = vector.load %arg5[%c8, %c0_48, %c0_49] : memref<9x8x4xf32, #tpu.memory_space<vmem>>, vector<1x8x4xf32>
    %91 = vector.shape_cast %90 : vector<1x8x4xf32> to vector<8x4xf32>
    %cst_50 = arith.constant dense<0.000000e+00> : vector<8x256xf32>
    %92 = tpu.matmul %91, %89, %cst_50 {dimension_numbers = #tpu.dot_dimension_numbers<[1], [0], [0], [1], [0, 0, 1, 1], [], []>} : vector<8x4xf32>, vector<4x256xf32>, vector<8x256xf32> -> vector<8x256xf32>
    %93 = arith.addf %84, %92 : vector<8x256xf32>
    %c0_51 = arith.constant 0 : index
    %c0_52 = arith.constant 0 : index
    %c0_53 = arith.constant 0 : index
    %94 = vector.load %arg6[%c0_51, %c0_52, %c0_53] : memref<1x8x1xf32, #tpu.memory_space<vmem>>, vector<1x8x1xf32>
    %95 = vector.shape_cast %94 : vector<1x8x1xf32> to vector<8x1xf32>
    %96 = vector.broadcast %95 : vector<8x1xf32> to vector<8x256xf32>
    %97 = arith.mulf %93, %96 : vector<8x256xf32>
    %c0_54 = arith.constant 0 : index
    %c0_55 = arith.constant 0 : index
    %c0_56 = arith.constant 0 : index
    %98 = vector.load %arg7[%c0_54, %c0_55, %c0_56] : memref<1x1x256xf32, #tpu.memory_space<vmem>>, vector<1x1x256xf32>
    %99 = vector.shape_cast %98 : vector<1x1x256xf32> to vector<1x256xf32>
    %100 = vector.broadcast %99 : vector<1x256xf32> to vector<8x256xf32>
    %101 = arith.addf %97, %100 : vector<8x256xf32>
    %c0_57 = arith.constant 0 : index
    %c0_58 = arith.constant 0 : index
    %102 = vector.load %arg8[%c0_57, %c0_58] : memref<8x1xf32, #tpu.memory_space<vmem>>, vector<8x1xf32>
    %103 = vector.broadcast %102 : vector<8x1xf32> to vector<8x256xf32>
    %104 = arith.addf %101, %103 : vector<8x256xf32>
    %cst_59 = arith.constant 0.000000e+00 : f32
    %105 = vector.broadcast %cst_59 : f32 to vector<8x256xf32>
    %106 = arith.cmpf oge, %104, %105 : vector<8x256xf32>
    %cst_60 = arith.constant 2.000000e-01 : f32
    %107 = vector.broadcast %cst_60 : f32 to vector<8x256xf32>
    %108 = arith.mulf %107, %104 : vector<8x256xf32>
    %109 = arith.select %106, %104, %108 : vector<8x256xi1>, vector<8x256xf32>
    %cst_61 = arith.constant 1.41421354 : f32
    %110 = vector.broadcast %cst_61 : f32 to vector<8x256xf32>
    %111 = arith.mulf %109, %110 : vector<8x256xf32>
    %c0_62 = arith.constant 0 : index
    %c0_63 = arith.constant 0 : index
    %c0_64 = arith.constant 0 : index
    %112 = vector.load %arg9[%c0_62, %c0_63, %c0_64] : memref<1x8x256xf32, #tpu.memory_space<vmem>>, vector<1x8x256xf32>
    %113 = vector.shape_cast %112 : vector<1x8x256xf32> to vector<8x256xf32>
    %114 = vector.shape_cast %111 : vector<8x256xf32> to vector<1x8x256xf32>
    tpu.vector_store %arg9[%c0_62, %c0_63, %c0_64], %114 {strides = array<i32>} : memref<1x8x256xf32, #tpu.memory_space<vmem>>, vector<1x8x256xf32>,
    return
  }
  func.func @transform_0(%arg0: i32, %arg1: i32) -> (i32, i32, i32) {
    %c0_i32 = arith.constant 0 : i32
    %c0_i32_0 = arith.constant 0 : i32
    return %arg0, %c0_i32, %arg1 : i32, i32, i32
  }
  func.func @transform_1(%arg0: i32, %arg1: i32) -> (i32, i32, i32) {
    %c0_i32 = arith.constant 0 : i32
    %c0_i32_0 = arith.constant 0 : i32
    return %arg0, %c0_i32, %arg1 : i32, i32, i32
  }
  func.func @transform_2(%arg0: i32, %arg1: i32) -> (i32, i32, i32) {
    %c0_i32 = arith.constant 0 : i32
    %c0_i32_0 = arith.constant 0 : i32
    return %arg0, %c0_i32, %arg1 : i32, i32, i32
  }
  func.func @transform_3(%arg0: i32, %arg1: i32) -> (i32, i32, i32) {
    %c0_i32 = arith.constant 0 : i32
    %c0_i32_0 = arith.constant 0 : i32
    %c0_i32_1 = arith.constant 0 : i32
    %c0_i32_2 = arith.constant 0 : i32
    return %c0_i32, %c0_i32_0, %c0_i32_1 : i32, i32, i32
  }
  func.func @transform_4(%arg0: i32, %arg1: i32) -> (i32, i32, i32) {
    %c0_i32 = arith.constant 0 : i32
    %c0_i32_0 = arith.constant 0 : i32
    %c0_i32_1 = arith.constant 0 : i32
    return %arg0, %c0_i32, %c0_i32_0 : i32, i32, i32
  }
  func.func @transform_5(%arg0: i32, %arg1: i32) -> (i32, i32, i32) {
    %c0_i32 = arith.constant 0 : i32
    %c0_i32_0 = arith.constant 0 : i32
    %c0_i32_1 = arith.constant 0 : i32
    return %c0_i32, %c0_i32_0, %arg1 : i32, i32, i32
  }
  func.func @transform_6(%arg0: i32, %arg1: i32) -> (i32, i32) {
    %c0_i32 = arith.constant 0 : i32
    %c0_i32_0 = arith.constant 0 : i32
    %c0_i32_1 = arith.constant 0 : i32
    return %c0_i32, %c0_i32_0 : i32, i32
  }
  func.func @transform_7(%arg0: i32, %arg1: i32) -> (i32, i32, i32) {
    %c0_i32 = arith.constant 0 : i32
    %c0_i32_0 = arith.constant 0 : i32
    return %arg0, %c0_i32, %arg1 : i32, i32, i32
  }
}

</mosaic_0001>

<bundles_post_ra>
// kernel: tpu_custom_call.1
= control target key start
LH: loop header
LB: loop body
LE: loop exit
PB: predicated region body
PF: predicated region fallthrough
CT: control target
= control target key end

     0   :  { %12 = vsyncpa [#allocation3], 0  ;;  %s1976_s0 = inlined_call_operand.vmem [shape: f32[2,4,256], index: 0, kind: input, shape index: {}]   ;;  %s1977_s1 = inlined_call_operand.vmem [shape: f32[2,4,256], index: 1, kind: input, shape index: {}]   ;;  %s1978_s2 = inlined_call_operand.vmem [shape: f32[2,4,256], index: 2, kind: input, shape index: {}]   ;;  %s1979_s3 = inlined_call_operand.vmem [shape: f32[9,8,4], index: 3, kind: input, shape index: {}]   ;;  %s1980_s4 = inlined_call_operand.vmem [shape: f32[2,8,1], index: 4, kind: input, shape index: {}]   ;;  %s1981_s5 = inlined_call_operand.vmem [shape: f32[1,1,256], index: 5, kind: input, shape index: {}]   ;;  %s1982_s6 = inlined_call_operand.vmem [shape: f32[8,1], index: 6, kind: input, shape index: {}]   ;;  %s1983_s7 = inlined_call_operand.hbm [shape: f32[2,8,256], index: 7, kind: output, shape index: {}]  }
   0x1   :  { %14 = vsyncpa [#allocation3 + $0x1], 0  ;;  %s1702_s24 = smov 0   ;;  %s1704_s25 = smov 0  }
   0x2   :  { %s1706_s26 = smov 0   ;;  %s1708_s27 = smov 0  }
   0x3   :  { %s1710_s28 = smov 0   ;;  %s1712_s29 = smov 0  }
   0x4 LB: > { %s1457_s30 = sadd.s32 4294967295, %s1655_s29   ;;  %s1458_s8 = sadd.s32 4294967294, %s1655_s29   ;;  %s1655_s29 = sphi %s1712_s29, %s20_s29   ;;  %s1651_s28 = sphi %s1710_s28, %s1998_s28   ;;  %s1647_s27 = sphi %s1708_s27, %s1997_s27   ;;  %s1643_s26 = sphi %s1706_s26, %s1996_s26   ;;  %s1639_s25 = sphi %s1704_s25, %s1995_s25   ;;  %s1635_s24 = sphi %s1702_s24, %s1994_s24  }
   0x5   : > { %s32_s9 = sadd.s32 1, %s1651_s28  ;;  %s219_s10 = sadd.s32 1, %s1643_s26 }
   0x6   : > { %p34_p0 = scmp.ge.s32.totalorder %s32_s9, 2  ;;  %p229_p1 = scmp.ne.s32.totalorder %s1643_s26, %s1639_s25 }
   0x7   : > { %p230_p2 = scmp.eq.s32.totalorder %s1457_s30, 1  ;;  %p235_p3 = scmp.ne.s32.totalorder %s1639_s25, %s1635_s24 }
   0x8   : > { %s2000_s9 = smov (%p34_p0, %s32_s9), 0  ;;  %p236_p5 = scmp.eq.s32.totalorder %s1458_s8, 1 }
   0x9   : > { %p1742_p4 = por %p230_p2, %p229_p1  ;;  %s214_s12 = ssub.s32 %s1651_s28, %s2000_s9 }
   0xa   : > { %p1462_p6 = scmp.ge.s32.totalorder %s1655_s29, 1  ;;  %p217_p7 = scmp.eq.s32.totalorder %s214_s12, 0 }
   0xb   : > { %p1749_p8 = por %p236_p5, %p235_p3  ;;  %p314_p9 = scmp.lt.s32.totalorder %s1655_s29, 3 }
   0xc   : > { %s1755_s14 = scalar_select %p217_p7, %s1643_s26, %s219_s10  }
   0xd   : > { %p315_p10 = pnand %p1462_p6, %p314_p9 }
   0xe   : > { %p377_p11 = scmp.lt.s32.totalorder (!%p315_p10), %s1647_s27, 1  ;;  %s1658_s23 = smov (!%p315_p10), 127  }
   0xf   : > { %318 = sbr.rel (%p315_p10) target bundleno = 385 (0x181), region = 48  ;;  %s1659_s30 = smov (!%p315_p10), 1  }
  0x10   : > { %s373_s12 = sand.u32 (!%p315_p10), 1, %s1639_s25  }
  0x14   : > { %v1657_v0 = vmov 0.0   ;;  %s378_s15 = scalar_select %p377_p11, %s1647_s27, 1  ;;  %vm473_vm0 = vcmask 1043456   ;;  %v1471_v4 = vld [vmem:[%s1979_s3 + $0x8] sm:$0xff]  ;;  %vm469_vm1 = vcmask 31744   ;;  %v1660_v8 = vmov 0  }
  0x15   : > { %542 = vmatprep.mubr.f32.mxu0 %v1657_v0  ;;  %622 = vmatprep.mubr.f32.mxu1 %v1657_v0  ;;  %v1286_v10 = vld [vmem:[%s1982_s6] sm:$0xff]  ;;  %v416_v11 = vlaneseq  ;;  %v1478_v33 = vld [vmem:[%s1979_s3 + $0x10] sm:$0xff]  ;;  %v1482_v40 = vld [vmem:[%s1979_s3 + $0x18] sm:$0xff] }
  0x16   : > { %s1761_s16 = sshll.u32 %s378_s15, 3  ;;  %1574 = vset.pattern.permute.xlu0 %v1660_v8  ;;  %1575 = vset.pattern.permute.xlu1 %v1660_v8  ;;  %v466_v32 = vld [vmem:[%s1979_s3] sm:$0xff]  ;;  %v1490_v48 = vld [vmem:[%s1979_s3 + $0x28] sm:$0xff]  ;;  %v1494_v55 = vld [vmem:[%s1979_s3 + $0x30] sm:$0xff]  ;;  %s1463_s15 = sshll.u32 %s373_s12, 4 }
  0x17   : > { %s384_s19 = scalar_lea.vmem %s1976_s0, %s1761_s16  ;;  %s394_s22 = scalar_lea.vmem %s1977_s1, %s1761_s16  ;;  %v1806_v12 = vand.u32 127, %v416_v11  ;;  %v1486_v41 = vld [vmem:[%s1979_s3 + $0x20] sm:$0xff]  ;;  %v1498_v56 = vld [vmem:[%s1979_s3 + $0x38] sm:$0xff]  ;;  %v1275_v20 = vshrl.u32 %v416_v11, 7 }
  0x18   : > { %v447_v1 = vld [vmem:[%s384_s19] sm:$0xff]  ;;  %s404_s17 = scalar_lea.vmem %s1978_s2, %s1761_s16  ;;  %s409_s20 = scalar_lea.vmem %s1980_s4, %s1761_s16 }
  0x19   : > { %629 = vrot.lane.b32.xlu1 %v447_v1, %s1658_s23  ;;  %453 = vrot.lane.b32.xlu0 %v447_v1, %s1659_s30  ;;  %v451_v2 = vcombine.high %v447_v1, %v447_v1  ;;  %v1771_v3 = vld [vmem:[%s394_s22] sm:$0xff]  ;;  %v418_v13 = vadd.s32 128, %v1806_v12  ;;  %v423_v14 = vand.u32 15, %v1806_v12  ;;  %vm633_vm2 = vcmp.lt.s32.totalorder %v1806_v12, 127  ;;  %s375_s18 = scalar_lea.vmem [#allocation2], %s1463_s15  ;;  %s1305_s16 = scalar_lea.sflag [#allocation3], %s373_s12 }
  0x1a   : > { %v727_v5 = vcombine.high %v1771_v3, %v1771_v3  ;;  %v1787_v6 = vld [vmem:[%s404_s17] sm:$0xff]  ;;  %vm457_vm3 = vcmp.lt.s32.totalorder %v1806_v12, 1  ;;  %s1514_s17 = sshll.u32 %s1647_s27, 8  ;;  %s1321_s19 = sshll.u32 %s375_s18, 4  ;;  %s1322_s19 = int_to_ptr.vmem [resolvable:$true] %s1321_s19 }
  0x1b   : > { %1472 = vmatprep.subr.msk.mxu0 %vm473_vm0, %v451_v2  ;;  %v1792_v7 = vcombine.high %v1787_v6, %v1787_v6  ;;  %v1264_v9 = vld [vmem:[%s409_s20] sm:$0xff]  ;;  %v430_v15 = vand.u32 15, %v418_v13  ;;  %vm1812_vm4 = vcmp.lt.s32.totalorder %v423_v14, 15  ;;  %vm1824_vm7 = vcmp.gt.s32.totalorder %v423_v14, 0  ;;  %s1319_s22 = scalar_lea.hbm %s1983_s7, %s1514_s17 }
  0x1c   : > { %1473 = vmatpush1.msk.msra.mxu0 %vm473_vm0, %v447_v1  ;;  %v1502_v63 = vld [vmem:[%s1979_s3 + $0x40] sm:$0xff] }
  0x1d   : > { %631 = vrot.lane.b32.xlu1 %v451_v2, %s1658_s23  ;;  %455 = vrot.lane.b32.xlu0 %v451_v2, %s1659_s30  ;;  %vm1816_vm5 = vcmp.lt.s32.totalorder %v430_v15, 15  ;;  %vm1820_vm6 = vcmp.gt.s32.totalorder %v430_v15, 0 }
  0x1e   : > { %1474 = vmatmul.mubr.msk.f32.vlgmr.msra.gmra.mxu0 %vm469_vm1, %v1471_v4 }
  0x1f   : > { %717 = vmatprep.mubr.f32.mxu0 %v1657_v0 }
  0x21   : > { %731 = vrot.lane.b32.xlu1 %v727_v5, %s1659_s30  ;;  %729 = vrot.lane.b32.xlu0 %v1771_v3, %s1659_s30 }
  0x25   : > { %905 = vrot.lane.b32.xlu1 %v727_v5, %s1658_s23  ;;  %903 = vrot.lane.b32.xlu0 %v1771_v3, %s1658_s23 }
  0x29   : > { %1000 = vrot.lane.b32.xlu1 %v1792_v7, %s1659_s30  ;;  %998 = vrot.lane.b32.xlu0 %v1787_v6, %s1659_s30  ;;  %s1661_s30 = smov [#allocation2]  }
  0x2a   : > { %s1583_s27 = sshll.u32 %s1661_s30, 4  ;;  %s1584_s27 = int_to_ptr.vmem [resolvable:$false] %s1583_s27 }
  0x2b   : > { %s1585_s8 = scalar_lea.vmem %s1584_s27, 512  ;;  %p1586_p1 = scmp.lt.s32.totalorder %s1322_s19, %s1584_s27 }
  0x2d   : > { %1174 = vrot.lane.b32.xlu1 %v1792_v7, %s1658_s23  ;;  %1172 = vrot.lane.b32.xlu0 %v1787_v6, %s1658_s23  ;;  %s1579_s23 = scalar_lea.vmem %s1322_s19, 256 }
  0x2e   : > { %p1580_p12 = scmp.ne.s32.totalorder %s1322_s19, %s1579_s23  ;;  %p1587_p2 = scmp.lt.s32.totalorder %s1585_s8, %s1579_s23 }
  0x30   : > { %p1581_p13 = pnand %p1580_p12, %p1742_p4  ;;  %p1588_p3 = por %p1587_p2, %p1586_p1 }
  0x31   : > { %1267 = vperm.xlu0 %1574, %v1264_v9   ;;  %1289 = vperm.xlu1 %1575, %v1286_v10  }
  0x32   : > { %p1582_p0 = pneg %p1581_p13 }
  0x34   : > { %p1589_p5 = pnand %p1588_p3, %p1582_p0 }
  0x8b   : > { %v630_v16 = vpop.permute.xlu1 %629  ;;  %v454_v17 = vpop.permute.xlu0 %453 }
  0x8f   : > { %v632_v22 = vpop.permute.xlu1 %631  ;;  %v456_v23 = vpop.permute.xlu0 %455 }
  0x90   : > { %v634_v24 = vsel %vm633_vm2, %v630_v16, %v632_v22  ;;  %v635_v25 = vsel %vm633_vm2, %v632_v22, %v630_v16  ;;  %v459_v26 = vsel %vm457_vm3, %v456_v23, %v454_v17  ;;  %v458_v27 = vsel %vm457_vm3, %v454_v17, %v456_v23 }
  0x91   : > { %v640_v28 = vsel %vm1812_vm4, %v634_v24, 0.0  ;;  %v641_v29 = vsel %vm1816_vm5, %v635_v25, 0.0  ;;  %v465_v30 = vsel %vm1820_vm6, %v458_v27, 0.0  ;;  %v464_v31 = vsel %vm1824_vm7, %v459_v26, 0.0 }
  0x92   : > { %1475 = vmatprep.subr.msk.mxu1 %vm473_vm0, %v465_v30  ;;  %1479 = vmatprep.subr.msk.mxu0 %vm473_vm0, %v641_v29  ;;  %v1276_v27 = vsub.s32 0, %v1275_v20  ;;  %v1272_v29 = vld [vmem:[%s1981_s5] sm:$0x3] }
  0x93   : > { %v732_v34 = vpop.permute.xlu1 %731  ;;  %1476 = vmatpush1.msk.msra.mxu1 %vm473_vm0, %v464_v31  ;;  %v730_v35 = vpop.permute.xlu0 %729  ;;  %1480 = vmatpush1.msk.msra.mxu0 %vm473_vm0, %v640_v28 }
  0x94   : > { %v733_v36 = vsel %vm457_vm3, %v730_v35, %v732_v34  ;;  %v734_v37 = vsel %vm457_vm3, %v732_v34, %v730_v35  ;;  %1477 = vmatmul.mubr.msk.f32.vlgmr.msra.gmra.mxu1 %vm469_vm1, %v466_v32  ;;  %1481 = vmatmul.mubr.msk.f32.vlgmr.msra.gmra.mxu0 %vm469_vm1, %v1478_v33  ;;  %v1280_v33 = vsub.s32 1, %v1275_v20 }
  0x95   : > { %v735_v38 = vsel %vm1824_vm7, %v734_v37, 0.0  ;;  %v736_v39 = vsel %vm1820_vm6, %v733_v36, 0.0  ;;  %812 = vmatprep.mubr.f32.mxu1 %v1657_v0  ;;  %1487 = vmatprep.subr.msk.mxu0 %vm473_vm0, %v727_v5  ;;  %v1277_v37 = vrot.slane %v1272_v29, %v1276_v27 }
  0x96   : > { %1483 = vmatprep.subr.msk.mxu1 %vm473_vm0, %v736_v39  ;;  %1488 = vmatpush1.msk.msra.mxu0 %vm473_vm0, %v1771_v3 }
  0x97   : > { %v906_v42 = vpop.permute.xlu1 %905  ;;  %1484 = vmatpush1.msk.msra.mxu1 %vm473_vm0, %v735_v38  ;;  %v904_v43 = vpop.permute.xlu0 %903  ;;  %894 = vmatprep.mubr.f32.mxu0 %v1657_v0 }
  0x98   : > { %v907_v44 = vsel %vm633_vm2, %v904_v43, %v906_v42  ;;  %v908_v45 = vsel %vm633_vm2, %v906_v42, %v904_v43  ;;  %1485 = vmatmul.mubr.msk.f32.vlgmr.msra.gmra.mxu1 %vm469_vm1, %v1482_v40  ;;  %1489 = vmatmul.mubr.msk.f32.vlgmr.msra.gmra.mxu0 %vm469_vm1, %v1486_v41  ;;  %v1281_v41 = vrot.slane %v1272_v29, %v1280_v33 }
  0x99   : > { %v909_v46 = vsel %vm1812_vm4, %v907_v44, 0.0  ;;  %v910_v47 = vsel %vm1816_vm5, %v908_v45, 0.0  ;;  %986 = vmatprep.mubr.f32.mxu1 %v1657_v0  ;;  %1081 = vmatprep.mubr.f32.mxu0 %v1657_v0 }
  0x9a   : > { %1491 = vmatprep.subr.msk.mxu1 %vm473_vm0, %v910_v47 }
  0x9b   : > { %v1001_v49 = vpop.permute.xlu1 %1000  ;;  %1492 = vmatpush1.msk.msra.mxu1 %vm473_vm0, %v909_v46  ;;  %v999_v50 = vpop.permute.xlu0 %998 }
  0x9c   : > { %v1002_v51 = vsel %vm457_vm3, %v999_v50, %v1001_v49  ;;  %v1003_v52 = vsel %vm457_vm3, %v1001_v49, %v999_v50  ;;  %1493 = vmatmul.mubr.msk.f32.vlgmr.msra.gmra.mxu1 %vm469_vm1, %v1490_v48  ;;  %1499 = vmatprep.subr.msk.mxu1 %vm473_vm0, %v1792_v7 }
  0x9d   : > { %v1004_v53 = vsel %vm1824_vm7, %v1003_v52, 0.0  ;;  %v1005_v54 = vsel %vm1820_vm6, %v1002_v51, 0.0  ;;  %1500 = vmatpush1.msk.msra.mxu1 %vm473_vm0, %v1787_v6  ;;  %1163 = vmatprep.mubr.f32.mxu1 %v1657_v0 }
  0x9e   : > { %1495 = vmatprep.subr.msk.mxu0 %vm473_vm0, %v1005_v54 }
  0x9f   : > { %v1175_v57 = vpop.permute.xlu1 %1174  ;;  %v1173_v58 = vpop.permute.xlu0 %1172  ;;  %1496 = vmatpush1.msk.msra.mxu0 %vm473_vm0, %v1004_v53 }
  0xa0   : > { %v1176_v59 = vsel %vm633_vm2, %v1173_v58, %v1175_v57  ;;  %v1177_v60 = vsel %vm633_vm2, %v1175_v57, %v1173_v58  ;;  %1497 = vmatmul.mubr.msk.f32.vlgmr.msra.gmra.mxu0 %vm469_vm1, %v1494_v55  ;;  %1501 = vmatmul.mubr.msk.f32.vlgmr.msra.gmra.mxu1 %vm469_vm1, %v1498_v56 }
  0xa1   : > { %v1178_v61 = vsel %vm1812_vm4, %v1176_v59, 0.0  ;;  %v1179_v62 = vsel %vm1816_vm5, %v1177_v60, 0.0  ;;  %1255 = vmatprep.mubr.f32.mxu0 %v1657_v0 }
  0xa2   : > { %1503 = vmatprep.subr.msk.mxu0 %vm473_vm0, %v1179_v62 }
  0xa3   : > { %1504 = vmatpush1.msk.msra.mxu0 %vm473_vm0, %v1178_v61 }
  0xa4   : > { %1505 = vmatmul.mubr.msk.f32.vlgmr.msra.gmra.mxu0 %vm469_vm1, %v1502_v63 }
  0xac   : > { %v1268_v32 = vpop.permute.xlu0 %1267  ;;  %v1290_v42 = vpop.permute.xlu1 %1289 }
  0xde   : > { %v544_v1 = vpop.f32.mrf.mxu0 }
  0xe0   : > { %v546_v2 = vpop.f32.mrf.mxu0 }
 0x154   : > { %v624_v3 = vpop.f32.mrf.mxu1  ;;  %v719_v4 = vpop.f32.mrf.mxu0 }
 0x155   : > { %v625_v5 = vadd.f32 %v624_v3, %v544_v1 }
 0x156   : > { %v626_v6 = vpop.f32.mrf.mxu1  ;;  %v721_v7 = vpop.f32.mrf.mxu0 }
 0x157   : > { %v627_v8 = vadd.f32 %v626_v6, %v546_v2  ;;  %v724_v9 = vadd.f32 %v719_v4, %v625_v5 }
 0x158   : > { %v814_v0 = vpop.f32.mrf.mxu1  ;;  %v896_v10 = vpop.f32.mrf.mxu0 }
 0x159   : > { %v725_v12 = vadd.f32 %v721_v7, %v627_v8  ;;  %v819_v13 = vadd.f32 %v814_v0, %v724_v9 }
 0x15a   : > { %v816_v14 = vpop.f32.mrf.mxu1  ;;  %v898_v15 = vpop.f32.mrf.mxu0 }
 0x15b   : > { %v820_v16 = vadd.f32 %v816_v14, %v725_v12  ;;  %v901_v17 = vadd.f32 %v896_v10, %v819_v13 }
 0x15c   : > { %v988_v18 = vpop.f32.mrf.mxu1 }
 0x15d   : > { %v902_v19 = vadd.f32 %v898_v15, %v820_v16  ;;  %v993_v22 = vadd.f32 %v988_v18, %v901_v17 }
 0x15e   : > { %v990_v21 = vpop.f32.mrf.mxu1 }
 0x15f   : > { %v994_v25 = vadd.f32 %v990_v21, %v902_v19 }
 0x160   : > { %v1083_v23 = vpop.f32.mrf.mxu0  ;;  %v1165_v24 = vpop.f32.mrf.mxu1 }
 0x161   : > { %v1088_v26 = vadd.f32 %v1083_v23, %v993_v22 }
 0x162   : > { %v1085_v28 = vpop.f32.mrf.mxu0  ;;  %v1167_v34 = vpop.f32.mrf.mxu1 }
 0x163   : > { %v1089_v30 = vadd.f32 %v1085_v28, %v994_v25  ;;  %v1170_v31 = vadd.f32 %v1165_v24, %v1088_v26 }
 0x164   : > { %v1257_v35 = vpop.f32.mrf.mxu0 }
 0x165   : > { %v1171_v11 = vadd.f32 %v1167_v34, %v1089_v30  ;;  %v1262_v36 = vadd.f32 %v1257_v35, %v1170_v31 }
 0x166   : > { %v1259_v38 = vpop.f32.mrf.mxu0 }
 0x167   : > { %v1270_v39 = vmul.f32 %v1268_v32, %v1262_v36  ;;  %v1263_v40 = vadd.f32 %v1259_v38, %v1171_v11 }
 0x169   : > { %v1271_v43 = vmul.f32 %v1268_v32, %v1263_v40  ;;  %v1284_v44 = vadd.f32 %v1277_v37, %v1270_v39 }
 0x16b   : > { %v1285_v45 = vadd.f32 %v1281_v41, %v1271_v43  ;;  %v1292_v46 = vadd.f32 %v1290_v42, %v1284_v44 }
 0x16d   : > { %v1293_v47 = vadd.f32 %v1290_v42, %v1285_v45  ;;  %vm1294_vm8 = vcmp.ge.f32.partialorder %v1292_v46, 0.0  ;;  %v1296_v48 = vmul.f32 0.2, %v1292_v46 }
 0x16f   : > { %vm1295_vm9 = vcmp.ge.f32.partialorder %v1293_v47, 0.0  ;;  %v1297_v49 = vmul.f32 0.2, %v1293_v47  ;;  %v1298_v50 = vsel %vm1294_vm8, %v1292_v46, %v1296_v48 }
 0x170   : > { %v1300_v51 = vmul.f32 1.4142135, %v1298_v50 }
 0x171   : > { %v1299_v52 = vsel %vm1295_vm9, %v1293_v47, %v1297_v49 }
 0x172   : > { %v1301_v53 = vmul.f32 1.4142135, %v1299_v52  ;;  %1302 = vst [vmem:[%s375_s18] sm:$0xff] %v1300_v51 }
 0x174   : > { %1303 = vst [vmem:[%s375_s18 + $0x8] sm:$0xff] %v1301_v53 }
 0x175   : > { %1592 = shalt.err (!%p1589_p5)
}
 0x176   : > { %s1593_s10 = scalar_lea.hbm %s1319_s22, 256  ;;  %s1597_s17 = scalar_lea.hbm %s1983_s7, 512 }
 0x177   : > { %p1594_p6 = scmp.ne.s32.totalorder %s1319_s22, %s1593_s10  ;;  %p1598_p10 = scmp.lt.s32.totalorder %s1319_s22, %s1983_s7 }
 0x178   : > { %p1599_p11 = scmp.lt.s32.totalorder %s1597_s17, %s1593_s10 }
 0x179   : > { %p1595_p7 = pnand %p1594_p6, %p1742_p4 }
 0x17a   : > { %p1600_p12 = por %p1599_p11, %p1598_p10 }
 0x17b   : > { %p1596_p9 = pneg %p1595_p7 }
 0x17d   : > { %p1601_p13 = pnand %p1600_p12, %p1596_p9 }
 0x17f   : > { %1604 = shalt.err (!%p1601_p13)
}
 0x180   : > { %1515 = dma.vmem_to_hbm [thread:$0]  (%p1742_p4), %s1322_s19, 256, %s1319_s22, %s1305_s16  }
 0x181 PF: > { %p1521_p0 = scmp.ge.s32.totalorder %s1655_s29, 2  ;;  %s1333_s21 = sand.u32 1, %s1635_s24  }
 0x182   : > { %s1334_s23 = scalar_lea.sflag [#allocation3], %s1333_s21 }
 0x183   : > { %p1518_p1 = pnand %p1521_p0, %p1749_p8 }
 0x185   : > { %p1519_p2 = pneg %p1518_p1 }
 0x187   : > { %1630 = dma.done.wait (%p1519_p2), %s1334_s23, 256  }
 0x188   : > { %1632 = vsyncadd (%p1519_p2), %s1334_s23, 4294967040  ;;  %s20_s29 = sadd.s32 1, %s1655_s29   ;;  %s1994_s24 = smov %s1639_s25 }
 0x189   : > { %p17_p3 = scmp.ge.s32.totalorder %s20_s29, 4   ;;  %s1995_s25 = smov %s1643_s26 }
 0x18a   : > { %s1996_s26 = smov %s1755_s14  ;;  %s1997_s27 = smov %s1651_s28 }
 0x18b   : > { %s1998_s28 = smov %s2000_s9  ;;  %19 = sbr.rel (!%p17_p3) target bundleno = 4 (0x4), region = 103 }
 0x190   :  { %1339 = vsyncpa [#allocation3], 1 }
 0x191   :  { %1341 = vsyncpa [#allocation3 + $0x1], 1 }

</bundles_post_ra>
